<compile_context>
chip_gen: v5e
topology: v5e:2x2
jax: 0.10.0
libtpu: 0.0.40
codegen_flags: <defaults>
</compile_context>

<pallas_src>
import jax
import jax.numpy as jnp
from jax.experimental import pallas as pl
from jax.experimental.pallas import tpu as pltpu

_H1, _H2 = 64, 32  # hidden widths of the PyTorch module


def _mlp_kernel(x_ref, w1_ref, w2_ref, c_ref, o_ref):
    """Fused 3-layer MLP forward for one batch tile (runs fully in VMEM).

    x_ref : (TB, D)   input tile in the caller's dtype (f32 or bf16)
    w1_ref: (D, 64)   bf16          w2_ref: (64, 32) bf16
    c_ref : (4, 64)   f32 packed constants:
                      row0 = b1, row1[:32] = b2, row2[:32] = w3ᵀ, row3[0] = b3
    o_ref : (1, TB)   f32 lane-dense output tile
    """
    x = x_ref[...]
    if x.dtype != jnp.bfloat16:
        # Cast on the VMEM tile (one VPU cast per tile; VALU has slack) so HBM
        # traffic stays at the caller's dtype — no wrapper-side cast pre-pass.
        x = x.astype(jnp.bfloat16)

    consts = c_ref[...]                     # (4, 64) f32, single vreg tile
    b1 = consts[0:1, :]                     # (1, 64)
    b2 = consts[1:2, :_H2]                  # (1, 32)
    w3 = consts[2:3, :_H2]                  # (1, 32)
    b3 = consts[3:4, 0:1]                   # (1, 1)

    # fc1 + ReLU  (dropout1 is identity in eval mode). bf16 MXU, f32 accumulate.
    h1 = jnp.dot(x, w1_ref[...], preferred_element_type=jnp.float32) + b1
    h1 = jnp.maximum(h1, 0.0)

    # fc2 + ReLU  (dropout2 is identity in eval mode).
    h2 = jnp.dot(h1.astype(jnp.bfloat16), w2_ref[...],
                 preferred_element_type=jnp.float32) + b2
    h2 = jnp.maximum(h2, 0.0)

    # fc3 + Sigmoid: 32 -> 1 on the VPU (multiply + lane reduction); an N=1 MXU
    # matmul would waste a whole MXU pass. The (TB,1) column is transposed to a
    # lane-dense (1,TB) row so the writeback uses full 128-lane stores instead
    # of masked 1-lane vst.msk partial stores.
    z = jnp.sum(h2 * w3, axis=-1, keepdims=True) + b3      # (TB, 1) f32
    y = jax.nn.sigmoid(z)                                   # (TB, 1) f32
    o_ref[...] = jnp.transpose(y).astype(o_ref.dtype)       # (1, TB)


def _round_up(n, m):
    return -(-n // m) * m


def _num_tensorcores():
    """Best-effort TensorCore count of the local chip (2 on v7x, else 1)."""
    try:
        kind = jax.devices()[0].device_kind.lower()
    except Exception:
        return 1
    return 2 if "v7" in kind else 1


def _pick_batch_tile(B, D, itemsize, num_cores):
    """Pick the batch tile:
       * ~4 MiB of x per pipeline buffer (double-buffered + f32 intermediates
         fits the 32 MiB scoped-VMEM budget on v5e/v6e/v7x), row cap 8192,
       * multiple of 128 when multi-tile (keeps the lane-dense out block
         unmasked and the x block sublane-aligned),
       * on v7x, clamped so both TensorCores get at least one tile,
       * equal to B when the whole batch fits in one tile (no partial blocks).
    """
    target_bytes = 4 * 1024 * 1024
    rows = target_bytes // max(D * itemsize, 1)
    rows = max(128, min(8192, (rows // 128) * 128))
    if num_cores > 1:                       # v7x megacore: >= 1 tile per core
        rows = min(rows, max(128, _round_up(pl.cdiv(B, num_cores), 128)))
    if rows >= B:                           # single tile: exactly the batch
        rows = B
    return rows


def neural_net_forward(x, params, *, batch_tile=None):
    """Run the fused MLP kernel.

    x:      (B, input_dim) float32 or bfloat16 — streamed to the kernel as-is
            (pass bf16 to halve HBM bytes on the dominant input).
    params: dict with w1 (D,64), b1 (1,64), w2 (64,32), b2 (1,32),
            w3 (32,1), b3 (1,1) — float32 (PyTorch layout, weights transposed).
    Returns (B, 1) float32, matching the PyTorch module's output.
    """
    B, D = x.shape
    itemsize = jnp.dtype(x.dtype).itemsize

    if batch_tile is None:
        batch_tile = _pick_batch_tile(B, D, itemsize, _num_tensorcores())
    else:
        batch_tile = int(batch_tile)
        if batch_tile >= B:
            batch_tile = B                               # single full-batch tile
        else:
            batch_tile = max(128, (batch_tile // 128) * 128)  # lane-aligned tiles

    num_tiles = pl.cdiv(B, batch_tile)
    padded = num_tiles * batch_tile          # output columns; tail sliced off

    # Tiny resident operands (constant index_map -> fetched once, < 10 KiB).
    # For repeated calls these casts/packing can be hoisted out of the hot loop.
    w1 = params["w1"].astype(jnp.bfloat16)               # (D, 64)
    w2 = params["w2"].astype(jnp.bfloat16)               # (64, 32)
    consts = jnp.zeros((4, _H1), jnp.float32)
    consts = consts.at[0, :].set(params["b1"].reshape(-1).astype(jnp.float32))
    consts = consts.at[1, :_H2].set(params["b2"].reshape(-1).astype(jnp.float32))
    consts = consts.at[2, :_H2].set(params["w3"].reshape(-1).astype(jnp.float32))
    consts = consts.at[3, 0].set(params["b3"].reshape(-1)[0].astype(jnp.float32))

    out = pl.pallas_call(
        _mlp_kernel,
        out_shape=jax.ShapeDtypeStruct((1, padded), jnp.float32),
        grid_spec=pltpu.PrefetchScalarGridSpec(
            num_scalar_prefetch=0,
            grid=(num_tiles,),
            in_specs=[
                # x tile: the only pipelined / HBM-dominant stream. The last
                # block may be partial (OOB tail is garbage -> sliced off).
                pl.BlockSpec((batch_tile, D), lambda i: (i, 0)),
                pl.BlockSpec(w1.shape, lambda i: (0, 0)),      # resident
                pl.BlockSpec(w2.shape, lambda i: (0, 0)),      # resident
                pl.BlockSpec(consts.shape, lambda i: (0, 0)),  # resident
            ],
            # Lane-dense output: one 128-lane-wide row per grid step.
            out_specs=pl.BlockSpec((1, batch_tile), lambda i: (0, i)),
        ),
        compiler_params=pltpu.CompilerParams(
            dimension_semantics=("parallel",),   # shard batch tiles across TCs
            # 2 x <=4 MiB x buffers + f32 h1/h2 intermediates stay well under
            # 32 MiB on every generation (raises v5e's 16 MiB scoped default,
            # within v7x's 64 MiB physical VMEM).
            vmem_limit_bytes=32 * 1024 * 1024,
        ),
    )(x, w1, w2, consts)

    # Drop the (tiny) padded tail and restore the PyTorch (B, 1) shape.
    return out.reshape(-1)[:B].reshape(B, 1)


def init_params(key, input_dim):
    """Deterministic parameter init (Kaiming-uniform-ish, like PyTorch Linear)."""
    k1, k2, k3, k4, k5, k6 = jax.random.split(key, 6)

    def linear(kw, kb, fan_in, fan_out):
        bound = 1.0 / jnp.sqrt(fan_in)
        w = jax.random.uniform(kw, (fan_in, fan_out), jnp.float32, -bound, bound)
        b = jax.random.uniform(kb, (1, fan_out), jnp.float32, -bound, bound)
        return w, b

    w1, b1 = linear(k1, k2, input_dim, _H1)
    w2, b2 = linear(k3, k4, _H1, _H2)
    w3, b3 = linear(k5, k6, _H2, 1)
    return {"w1": w1, "b1": b1, "w2": w2, "b2": b2, "w3": w3, "b3": b3}


def _reference_forward(x, p, *, bf16_inputs=False):
    """Pure-JAX reference. With bf16_inputs=True it mirrors the kernel's
    bf16-MXU / f32-accumulate math exactly; with False it is full f32 math
    (PyTorch-equivalent up to f32 rounding)."""
    cast = (lambda a: a.astype(jnp.bfloat16)) if bf16_inputs else (lambda a: a)
    h1 = jnp.maximum(
        jnp.dot(cast(x), cast(p["w1"]), preferred_element_type=jnp.float32)
        + p["b1"], 0.0)
    h2 = jnp.maximum(
        jnp.dot(cast(h1), cast(p["w2"]), preferred_element_type=jnp.float32)
        + p["b2"], 0.0)
    z = h2 @ p["w3"] + p["b3"]
    return jax.nn.sigmoid(z)


if __name__ == "__main__":
    key = jax.random.PRNGKey(0)
    k_param, k_x = jax.random.split(key)

    # Ragged batch (not a multiple of the tile) + small feature dim.
    B, INPUT_DIM = 300, 32
    params = init_params(k_param, INPUT_DIM)
    x = jax.random.normal(k_x, (B, INPUT_DIM), jnp.float32)

    ref_bf16 = _reference_forward(x, params, bf16_inputs=True)
    ref_f32 = _reference_forward(x, params, bf16_inputs=False)

    # Explicit small tile -> 3 grid steps (exercises pipelining + ragged tail).
    out = jax.block_until_ready(neural_net_forward(x, params, batch_tile=128))
    assert out.shape == (B, 1)
    assert jnp.allclose(out, ref_bf16, atol=2e-3, rtol=2e-3)
    assert jnp.allclose(out, ref_f32, atol=3e-2, rtol=3e-2)

    # Auto-tile path (single full-batch tile).
    out_auto = jax.block_until_ready(neural_net_forward(x, params))
    assert out_auto.shape == (B, 1)
    assert jnp.allclose(out_auto, ref_bf16, atol=2e-3, rtol=2e-3)

    # bf16 end-to-end streaming of x (caller-supplied bf16) on a tiny batch.
    out_small = jax.block_until_ready(
        neural_net_forward(x[:8].astype(jnp.bfloat16), params))
    assert out_small.shape == (8, 1)
    assert jnp.allclose(out_small, ref_bf16[:8], atol=5e-3, rtol=5e-3)

    print("KERNEL_OK")
</pallas_src>

<mosaic_0001>
module attributes {stable_mosaic.version = 11 : i64} {
  func.func @_mlp_kernel(%arg0: i32, %arg1: memref<128x32xf32, #tpu.memory_space<vmem>>, %arg2: memref<32x64xbf16, #tpu.memory_space<vmem>>, %arg3: memref<64x32xbf16, #tpu.memory_space<vmem>>, %arg4: memref<4x64xf32, #tpu.memory_space<vmem>>, %arg5: memref<1x128xf32, #tpu.memory_space<vmem>>) attributes {dimension_semantics = [#tpu.dimension_semantics<parallel>], iteration_bounds = array<i64: 3>, scalar_prefetch = 0 : i64, scratch_operands = 0 : i64, tpu.core_type = #tpu.core_type<tc>, window_params = [{transform_indices = @transform_0, window_bounds = array<i64: 128, 32>}, {pipeline_mode = #tpu.pipeline_mode<synchronous>, transform_indices = @transform_1, window_bounds = array<i64: 32, 64>}, {pipeline_mode = #tpu.pipeline_mode<synchronous>, transform_indices = @transform_2, window_bounds = array<i64: 64, 32>}, {pipeline_mode = #tpu.pipeline_mode<synchronous>, transform_indices = @transform_3, window_bounds = array<i64: 4, 64>}, {transform_indices = @transform_4, window_bounds = array<i64: 1, 128>}]} {
    %c0 = arith.constant 0 : index
    %c0_0 = arith.constant 0 : index
    %0 = vector.load %arg1[%c0, %c0_0] : memref<128x32xf32, #tpu.memory_space<vmem>>, vector<128x32xf32>
    %1 = arith.truncf %0 : vector<128x32xf32> to vector<128x32xbf16>
    %c0_1 = arith.constant 0 : index
    %c0_2 = arith.constant 0 : index
    %2 = vector.load %arg4[%c0_1, %c0_2] : memref<4x64xf32, #tpu.memory_space<vmem>>, vector<4x64xf32>
    %3 = vector.extract_strided_slice %2 {offsets = [0, 0], sizes = [1, 64], strides = [1, 1]} : vector<4x64xf32> to vector<1x64xf32>
    %4 = vector.extract_strided_slice %2 {offsets = [1, 0], sizes = [1, 32], strides = [1, 1]} : vector<4x64xf32> to vector<1x32xf32>
    %5 = vector.extract_strided_slice %2 {offsets = [2, 0], sizes = [1, 32], strides = [1, 1]} : vector<4x64xf32> to vector<1x32xf32>
    %6 = vector.extract_strided_slice %2 {offsets = [3, 0], sizes = [1, 1], strides = [1, 1]} : vector<4x64xf32> to vector<1x1xf32>
    %c0_3 = arith.constant 0 : index
    %c0_4 = arith.constant 0 : index
    %7 = vector.load %arg2[%c0_3, %c0_4] : memref<32x64xbf16, #tpu.memory_space<vmem>>, vector<32x64xbf16>
    %cst = arith.constant dense<0.000000e+00> : vector<128x64xf32>
    %8 = tpu.matmul %1, %7, %cst {dimension_numbers = #tpu.dot_dimension_numbers<[1], [0], [0], [1], [0, 0, 1, 1], [], []>} : vector<128x32xbf16>, vector<32x64xbf16>, vector<128x64xf32> -> vector<128x64xf32>
    %9 = vector.broadcast %3 : vector<1x64xf32> to vector<128x64xf32>
    %10 = arith.addf %8, %9 : vector<128x64xf32>
    %cst_5 = arith.constant 0.000000e+00 : f32
    %11 = vector.broadcast %cst_5 : f32 to vector<128x64xf32>
    %12 = arith.maximumf %10, %11 : vector<128x64xf32>
    %13 = arith.truncf %12 : vector<128x64xf32> to vector<128x64xbf16>
    %c0_6 = arith.constant 0 : index
    %c0_7 = arith.constant 0 : index
    %14 = vector.load %arg3[%c0_6, %c0_7] : memref<64x32xbf16, #tpu.memory_space<vmem>>, vector<64x32xbf16>
    %cst_8 = arith.constant dense<0.000000e+00> : vector<128x32xf32>
    %15 = tpu.matmul %13, %14, %cst_8 {dimension_numbers = #tpu.dot_dimension_numbers<[1], [0], [0], [1], [0, 0, 1, 1], [], []>} : vector<128x64xbf16>, vector<64x32xbf16>, vector<128x32xf32> -> vector<128x32xf32>
    %16 = vector.broadcast %4 : vector<1x32xf32> to vector<128x32xf32>
    %17 = arith.addf %15, %16 : vector<128x32xf32>
    %cst_9 = arith.constant 0.000000e+00 : f32
    %18 = vector.broadcast %cst_9 : f32 to vector<128x32xf32>
    %19 = arith.maximumf %17, %18 : vector<128x32xf32>
    %20 = vector.broadcast %5 : vector<1x32xf32> to vector<128x32xf32>
    %21 = arith.mulf %19, %20 : vector<128x32xf32>
    %cst_10 = arith.constant dense<0.000000e+00> : vector<128xf32>
    %22 = vector.multi_reduction <add>, %21, %cst_10 [1] : vector<128x32xf32> to vector<128xf32>
    %23 = vector.shape_cast %22 : vector<128xf32> to vector<128x1xf32>
    %24 = vector.broadcast %6 : vector<1x1xf32> to vector<128x1xf32>
    %25 = arith.addf %23, %24 : vector<128x1xf32>
    %26 = arith.negf %25 : vector<128x1xf32>
    %27 = math.exp %26 : vector<128x1xf32>
    %cst_11 = arith.constant 1.000000e+00 : f32
    %28 = vector.broadcast %cst_11 : f32 to vector<128x1xf32>
    %29 = arith.addf %28, %27 : vector<128x1xf32>
    %30 = arith.divf %28, %29 : vector<128x1xf32>
    %31 = tpu.transpose %30, [1, 0] : vector<128x1xf32> -> vector<1x128xf32>
    %c0_12 = arith.constant 0 : index
    %c0_13 = arith.constant 0 : index
    %32 = vector.load %arg5[%c0_12, %c0_13] : memref<1x128xf32, #tpu.memory_space<vmem>>, vector<1x128xf32>
    tpu.vector_store %arg5[%c0_12, %c0_13], %31 {strides = array<i32>} : memref<1x128xf32, #tpu.memory_space<vmem>>, vector<1x128xf32>,
    return
  }
  func.func @transform_0(%arg0: i32) -> (i32, i32) {
    %c0_i32 = arith.constant 0 : i32
    %c0_i32_0 = arith.constant 0 : i32
    return %arg0, %c0_i32 : i32, i32
  }
  func.func @transform_1(%arg0: i32) -> (i32, i32) {
    %c0_i32 = arith.constant 0 : i32
    %c0_i32_0 = arith.constant 0 : i32
    %c0_i32_1 = arith.constant 0 : i32
    return %c0_i32, %c0_i32_0 : i32, i32
  }
  func.func @transform_2(%arg0: i32) -> (i32, i32) {
    %c0_i32 = arith.constant 0 : i32
    %c0_i32_0 = arith.constant 0 : i32
    %c0_i32_1 = arith.constant 0 : i32
    return %c0_i32, %c0_i32_0 : i32, i32
  }
  func.func @transform_3(%arg0: i32) -> (i32, i32) {
    %c0_i32 = arith.constant 0 : i32
    %c0_i32_0 = arith.constant 0 : i32
    %c0_i32_1 = arith.constant 0 : i32
    return %c0_i32, %c0_i32_0 : i32, i32
  }
  func.func @transform_4(%arg0: i32) -> (i32, i32) {
    %c0_i32 = arith.constant 0 : i32
    %c0_i32_0 = arith.constant 0 : i32
    return %c0_i32, %arg0 : i32, i32
  }
}

</mosaic_0001>

<bundles_post_ra>
// kernel: tpu_custom_call.1
= control target key start
LH: loop header
LB: loop body
LE: loop exit
PB: predicated region body
PF: predicated region fallthrough
CT: control target
= control target key end

     0   :  { %9 = vsyncpa [#allocation3], 0  ;;  %s1559_s0 = inlined_call_operand.vmem [shape: f32[300,32], index: 0, kind: input, shape index: {}]   ;;  %s1560_s1 = inlined_call_operand.vmem [shape: bf16[32,64], index: 1, kind: input, shape index: {}]   ;;  %s1561_s2 = inlined_call_operand.vmem [shape: bf16[64,32], index: 2, kind: input, shape index: {}]   ;;  %s1562_s3 = inlined_call_operand.vmem [shape: f32[4,64], index: 3, kind: input, shape index: {}]   ;;  %s1563_s4 = inlined_call_operand.hbm [shape: f32[1,384], index: 4, kind: output, shape index: {}]  }
   0x1   :  { %11 = vsyncpa [#allocation3 + $0x1], 0  ;;  %s1236_s15 = smov 0   ;;  %s1238_s16 = smov 0  }
   0x2   :  { %s1240_s17 = smov 0   ;;  %s1242_s18 = smov 0  }
   0x3 LB: > { %s1257_s19 = sadd.s32 4294967295, %s1209_s18   ;;  %s968_s20 = sadd.s32 4294967294, %s1209_s18   ;;  %s1209_s18 = sphi %s1242_s18, %s1569_s18   ;;  %s1205_s17 = sphi %s1240_s17, %s1568_s17   ;;  %s1201_s16 = sphi %s1238_s16, %s1567_s16   ;;  %s1197_s15 = sphi %s1236_s15, %s1566_s15  }
   0x4   : > { %s1261_s21 = sadd.s32 1, %s1209_s18   ;;  %s113_s22 = sadd.s32 1, %s1205_s17 }
   0x5   : > { %s110_s23 = ssub.s32 %s1209_s18, %s1261_s21  ;;  %p123_p0 = scmp.ne.s32.totalorder %s1205_s17, %s1201_s16 }
   0x6   : > { %p111_p1 = scmp.eq.s32.totalorder %s110_s23, 0  ;;  %p124_p2 = scmp.eq.s32.totalorder %s1257_s19, 2 }
   0x7   : > { %p129_p3 = scmp.ne.s32.totalorder %s1201_s16, %s1197_s15  ;;  %p130_p4 = scmp.eq.s32.totalorder %s968_s20, 2 }
   0x8   : > { %s1272_s24 = scalar_select %p111_p1, %s1205_s17, %s113_s22  }
   0x9   : > { %p1274_p5 = por %p124_p2, %p123_p0  ;;  %p1278_p6 = por %p130_p4, %p129_p3 }
   0xa   : > { %p971_p7 = scmp.ge.s32.totalorder %s1209_s18, 1  ;;  %p174_p8 = scmp.lt.s32.totalorder %s1209_s18, 4 }
   0xc   : > { %p175_p9 = pnand %p971_p7, %p174_p8 }
   0xd   : > { %s972_s29 = sshll.u32 (!%p175_p9), %s1257_s19, 4  ;;  %s1167_s20 = scalar_lea.hbm (!%p175_p9), %s1563_s4, 3 }
   0xe   : > { %178 = sbr.rel (%p175_p9) target bundleno = 636 (0x27c), region = 36  ;;  %p208_p10 = scmp.lt.s32.totalorder (!%p175_p9), %s972_s29, 37 }
  0x13   : > { %v1033_v0 = vld [vmem:[%s1560_s1 + $0x8] sm:$0xff]  ;;  %v1032_v1 = vld [vmem:[%s1560_s1] sm:$0xff]  ;;  %s1571_s29 = smov (!%p208_p10, %s972_s29), 37  ;;  %vm260_vm0 = vcmask 261120   ;;  %v1037_v26 = vld [vmem:[%s1561_s2 + $0x18] sm:$0xff]  ;;  %vm391_vm1 = vcmask 523264  }
  0x14   : > { %291 = vmatpush.bf16.msra.mxu0 %v1033_v0  ;;  %1038 = vmatpush.bf16.msra.mxu3 %v1033_v0  ;;  %s973_s6 = sshll.u32 %s1571_s29, 3  ;;  %v1036_v27 = vld [vmem:[%s1561_s2 + $0x10] sm:$0xff]  ;;  %v1035_v28 = vld [vmem:[%s1561_s2 + $0x8] sm:$0xff]  ;;  %v1034_v29 = vld [vmem:[%s1561_s2] sm:$0xff]  ;;  %s201_s29 = sand.u32 1, %s1201_s16  }
  0x15   : > { %s211_s9 = scalar_lea.vmem %s1559_s0, %s973_s6  ;;  %420 = vmatpush.bf16.msra.mxu1 %v1037_v26  ;;  %1040 = vmatpush.bf16.msra.mxu2 %v1037_v26  ;;  %v1317_v30 = vld [vmem:[%s1562_s3] sm:$0xf]  ;;  %s909_s6 = scalar_lea.hbm %s1563_s4, %s1257_s19 }
  0x16   : > { %v218_v2 = vld [vmem:[%s211_s9] sm:$0xff]  ;;  %v219_v3 = vld [vmem:[%s211_s9 + $0x8] sm:$0xff]  ;;  %v220_v5 = vld [vmem:[%s211_s9 + $0x10] sm:$0xff]  ;;  %v247_v32 = vperm.slane %v1317_v30, 0  ;;  %s202_s7 = scalar_lea.vmem [#allocation2], %s201_s29  ;;  %s901_s10 = scalar_lea.sflag [#allocation3], %s201_s29 }
  0x17   : > { %v234_v4 = vpack.c.bf16 %v219_v3, %v218_v2  ;;  %v221_v6 = vld [vmem:[%s211_s9 + $0x18] sm:$0xff]  ;;  %v222_v8 = vld [vmem:[%s211_s9 + $0x20] sm:$0xff]  ;;  %v223_v9 = vld [vmem:[%s211_s9 + $0x28] sm:$0xff]  ;;  %s911_s8 = sshll.u32 %s202_s7, 4  ;;  %s912_s8 = int_to_ptr.vmem [resolvable:$true] %s911_s8 }
  0x18   : > { %292 = vmatpush.bf16.msra.mxu0 %v1032_v1  ;;  %1039 = vmatpush.bf16.msra.mxu3 %v1032_v1  ;;  %v235_v7 = vpack.c.bf16 %v221_v6, %v220_v5  ;;  %v236_v10 = vpack.c.bf16 %v223_v9, %v222_v8  ;;  %v228_v11 = vld [vmem:[%s211_s9 + $0x50] sm:$0xff]  ;;  %v229_v12 = vld [vmem:[%s211_s9 + $0x58] sm:$0xff]  ;;  %v230_v16 = vld [vmem:[%s211_s9 + $0x60] sm:$0xff] }
  0x19   : > { %v239_v13 = vpack.c.bf16 %v229_v12, %v228_v11  ;;  %v224_v14 = vld [vmem:[%s211_s9 + $0x30] sm:$0xff]  ;;  %v225_v15 = vld [vmem:[%s211_s9 + $0x38] sm:$0xff]  ;;  %v231_v17 = vld [vmem:[%s211_s9 + $0x68] sm:$0xff]  ;;  %421 = vmatpush.bf16.msra.mxu1 %v1036_v27  ;;  %1041 = vmatpush.bf16.msra.mxu2 %v1036_v27  ;;  %v1333_v27 = vperm.slane %v1317_v30, 2 }
  0x1a   : > { %v237_v18 = vpack.c.bf16 %v225_v15, %v224_v14  ;;  %v240_v19 = vpack.c.bf16 %v231_v17, %v230_v16  ;;  %v226_v20 = vld [vmem:[%s211_s9 + $0x40] sm:$0xff]  ;;  %v227_v21 = vld [vmem:[%s211_s9 + $0x48] sm:$0xff]  ;;  %v232_v22 = vld [vmem:[%s211_s9 + $0x70] sm:$0xff] }
  0x1b   : > { %982 = vmatmul.msk.bf16.vlgmr.msra.gmra.mxu0 %vm260_vm0, %v234_v4  ;;  %987 = vmatmul.msk.bf16.vlgmr.msra.gmra.mxu3 %vm260_vm0, %v239_v13  ;;  %v233_v23 = vld [vmem:[%s211_s9 + $0x78] sm:$0xff]  ;;  %v238_v24 = vpack.c.bf16 %v227_v21, %v226_v20  ;;  %s913_s9 = sshll.u32 %s909_s6, 4  ;;  %s914_s9 = int_to_ptr.hbm [resolvable:$true] %s913_s9 }
  0x1c   : > { %v241_v25 = vpack.c.bf16 %v233_v23, %v232_v22  ;;  %s1161_s11 = sshra.s32 %s914_s9, 4  ;;  %s1162_s11 = int_to_ptr.hbm [resolvable:$true] %s1161_s11 }
  0x1d   : > { %422 = vmatpush.bf16.msra.mxu1 %v1035_v28  ;;  %1042 = vmatpush.bf16.msra.mxu2 %v1035_v28  ;;  %s1163_s12 = scalar_lea.hbm %s1162_s11, 1  ;;  %p1168_p0 = scmp.lt.s32.totalorder %s1162_s11, %s1563_s4 }
  0x1e   : > { %p1164_p11 = scmp.ne.s32.totalorder %s1162_s11, %s1163_s12  ;;  %p1169_p1 = scmp.lt.s32.totalorder %s1167_s20, %s1163_s12 }
  0x20   : > { %p1165_p12 = pnand %p1164_p11, %p1274_p5  ;;  %p1170_p2 = por %p1169_p1, %p1168_p0 }
  0x21   : > { %423 = vmatpush.bf16.msra.mxu1 %v1034_v29  ;;  %1043 = vmatpush.bf16.msra.mxu2 %v1034_v29 }
  0x22   : > { %p1166_p13 = pneg %p1165_p12 }
  0x24   : > { %p1171_p3 = pnand %p1170_p2, %p1166_p13 }
  0x2b   : > { %983 = vmatmul.msk.bf16.gmra.mxu0 %vm260_vm0, %v235_v7  ;;  %988 = vmatmul.msk.bf16.gmra.mxu3 %vm260_vm0, %v240_v19 }
  0x3b   : > { %984 = vmatmul.msk.bf16.gmra.mxu0 %vm260_vm0, %v236_v10  ;;  %989 = vmatmul.msk.bf16.gmra.mxu3 %vm260_vm0, %v241_v25 }
  0x4b   : > { %985 = vmatmul.msk.bf16.gmra.mxu0 %vm260_vm0, %v237_v18 }
  0x5b   : > { %986 = vmatmul.msk.bf16.gmra.mxu0 %vm260_vm0, %v238_v24  ;;  %v1329_v24 = vperm.slane %v1317_v30, 1 }
  0x98   : > { %v294_v31 = vpop.f32.mrf.mxu0 }
  0x99   : > { %v295_v33 = vadd.f32 %v294_v31, %v247_v32 }
  0x9b   : > { %v334_v36 = vmax.f32 %v295_v33, 0.0 }
  0x9e   : > { %v319_v61 = vpop.f32.mrf.mxu3 }
  0x9f   : > { %v320_v6 = vadd.f32 %v319_v61, %v247_v32 }
  0xa0   : > { %v296_v34 = vpop.f32.mrf.mxu0 }
  0xa1   : > { %v297_v35 = vadd.f32 %v296_v34, %v247_v32  ;;  %v344_v8 = vmax.f32 %v320_v6, 0.0 }
  0xa3   : > { %v335_v37 = vmax.f32 %v297_v35, 0.0 }
  0xa5   : > { %v350_v38 = vpack.c.bf16 %v335_v37, %v334_v36 }
  0xa6   : > { %v321_v1 = vpop.f32.mrf.mxu3 }
  0xa7   : > { %1006 = vmatmul.msk.bf16.vlgmr.msra.gmra.mxu1 %vm391_vm1, %v350_v38  ;;  %v322_v7 = vadd.f32 %v321_v1, %v247_v32 }
  0xa8   : > { %v299_v39 = vpop.f32.mrf.mxu0 }
  0xa9   : > { %v300_v40 = vadd.f32 %v299_v39, %v247_v32  ;;  %v345_v9 = vmax.f32 %v322_v7, 0.0 }
  0xab   : > { %v336_v43 = vmax.f32 %v300_v40, 0.0  ;;  %v355_v10 = vpack.c.bf16 %v345_v9, %v344_v8 }
  0xae   : > { %v324_v5 = vpop.f32.mrf.mxu3 }
  0xaf   : > { %v325_v12 = vadd.f32 %v324_v5, %v247_v32 }
  0xb0   : > { %v301_v41 = vpop.f32.mrf.mxu0 }
  0xb1   : > { %v302_v42 = vadd.f32 %v301_v41, %v247_v32  ;;  %v346_v15 = vmax.f32 %v325_v12, 0.0 }
  0xb3   : > { %v337_v44 = vmax.f32 %v302_v42, 0.0 }
  0xb5   : > { %v351_v45 = vpack.c.bf16 %v337_v44, %v336_v43 }
  0xb6   : > { %v326_v11 = vpop.f32.mrf.mxu3 }
  0xb7   : > { %1007 = vmatmul.msk.bf16.gmra.mxu1 %vm391_vm1, %v351_v45  ;;  %v327_v13 = vadd.f32 %v326_v11, %v247_v32 }
  0xb8   : > { %v304_v46 = vpop.f32.mrf.mxu0 }
  0xb9   : > { %v305_v47 = vadd.f32 %v304_v46, %v247_v32  ;;  %v347_v16 = vmax.f32 %v327_v13, 0.0 }
  0xbb   : > { %v338_v50 = vmax.f32 %v305_v47, 0.0  ;;  %v356_v17 = vpack.c.bf16 %v347_v16, %v346_v15 }
  0xbe   : > { %v329_v14 = vpop.f32.mrf.mxu3 }
  0xbf   : > { %v330_v19 = vadd.f32 %v329_v14, %v247_v32 }
  0xc0   : > { %v306_v48 = vpop.f32.mrf.mxu0 }
  0xc1   : > { %v307_v49 = vadd.f32 %v306_v48, %v247_v32  ;;  %v348_v21 = vmax.f32 %v330_v19, 0.0 }
  0xc3   : > { %v339_v51 = vmax.f32 %v307_v49, 0.0 }
  0xc5   : > { %v352_v52 = vpack.c.bf16 %v339_v51, %v338_v50 }
  0xc6   : > { %v331_v18 = vpop.f32.mrf.mxu3 }
  0xc7   : > { %1008 = vmatmul.msk.bf16.gmra.mxu1 %vm391_vm1, %v352_v52  ;;  %v332_v20 = vadd.f32 %v331_v18, %v247_v32 }
  0xc8   : > { %v309_v53 = vpop.f32.mrf.mxu0 }
  0xc9   : > { %v310_v54 = vadd.f32 %v309_v53, %v247_v32  ;;  %v349_v22 = vmax.f32 %v332_v20, 0.0 }
  0xcb   : > { %v340_v57 = vmax.f32 %v310_v54, 0.0  ;;  %v357_v23 = vpack.c.bf16 %v349_v22, %v348_v21 }
  0xd0   : > { %v311_v55 = vpop.f32.mrf.mxu0 }
  0xd1   : > { %v312_v56 = vadd.f32 %v311_v55, %v247_v32 }
  0xd3   : > { %v341_v58 = vmax.f32 %v312_v56, 0.0 }
  0xd5   : > { %v353_v59 = vpack.c.bf16 %v341_v58, %v340_v57 }
  0xd7   : > { %1009 = vmatmul.msk.bf16.gmra.mxu1 %vm391_vm1, %v353_v59 }
  0xd8   : > { %v314_v60 = vpop.f32.mrf.mxu0 }
  0xd9   : > { %v315_v62 = vadd.f32 %v314_v60, %v247_v32 }
  0xdb   : > { %v342_v2 = vmax.f32 %v315_v62, 0.0 }
  0xe0   : > { %v316_v63 = vpop.f32.mrf.mxu0 }
  0xe1   : > { %v317_v0 = vadd.f32 %v316_v63, %v247_v32 }
  0xe3   : > { %v343_v3 = vmax.f32 %v317_v0, 0.0 }
  0xe5   : > { %v354_v4 = vpack.c.bf16 %v343_v3, %v342_v2 }
  0xe7   : > { %1010 = vmatmul.msk.bf16.vlgmr.msra.gmra.mxu2 %vm391_vm1, %v354_v4 }
  0xf7   : > { %1011 = vmatmul.msk.bf16.gmra.mxu2 %vm391_vm1, %v355_v10 }
 0x107   : > { %1012 = vmatmul.msk.bf16.gmra.mxu2 %vm391_vm1, %v356_v17 }
 0x117   : > { %1013 = vmatmul.msk.bf16.gmra.mxu2 %vm391_vm1, %v357_v23 }
 0x124   : > { %v425_v25 = vpop.f32.mrf.mxu1 }
 0x125   : > { %v426_v26 = vadd.f32 %v425_v25, %v1329_v24 }
 0x127   : > { %v465_v28 = vmax.f32 %v426_v26, 0.0 }
 0x129   : > { %v482_v29 = vmul.f32 %v1333_v27, %v465_v28 }
 0x12b   : > { %v498_v31 = vsel %vm260_vm0, %v482_v29, 0.0 }
 0x12c   : > { %v427_v32 = vpop.f32.mrf.mxu1  ;;  %499 = vadd.xlane.f32.xlu0 %v498_v31 }
 0x12d   : > { %v428_v33 = vadd.f32 %v427_v32, %v1329_v24 }
 0x12f   : > { %v466_v34 = vmax.f32 %v428_v33, 0.0 }
 0x131   : > { %v483_v35 = vmul.f32 %v1333_v27, %v466_v34 }
 0x133   : > { %v501_v36 = vsel %vm260_vm0, %v483_v35, 0.0 }
 0x134   : > { %v430_v37 = vpop.f32.mrf.mxu1  ;;  %502 = vadd.xlane.f32.xlu0 %v501_v36 }
 0x135   : > { %v431_v38 = vadd.f32 %v430_v37, %v1329_v24 }
 0x137   : > { %v467_v39 = vmax.f32 %v431_v38, 0.0 }
 0x139   : > { %v484_v40 = vmul.f32 %v1333_v27, %v467_v39  ;;  %v1378_v39 = vperm.slane %v1317_v30, 3 }
 0x13b   : > { %v504_v41 = vsel %vm260_vm0, %v484_v40, 0.0 }
 0x13c   : > { %v432_v42 = vpop.f32.mrf.mxu1  ;;  %505 = vadd.xlane.f32.xlu1 %v504_v41 }
 0x13d   : > { %v433_v43 = vadd.f32 %v432_v42, %v1329_v24 }
 0x13f   : > { %v468_v44 = vmax.f32 %v433_v43, 0.0 }
 0x141   : > { %v485_v45 = vmul.f32 %v1333_v27, %v468_v44 }
 0x143   : > { %v507_v46 = vsel %vm260_vm0, %v485_v45, 0.0 }
 0x144   : > { %v435_v47 = vpop.f32.mrf.mxu1  ;;  %508 = vadd.xlane.f32.xlu1 %v507_v46 }
 0x145   : > { %v436_v48 = vadd.f32 %v435_v47, %v1329_v24 }
 0x147   : > { %v469_v49 = vmax.f32 %v436_v48, 0.0 }
 0x149   : > { %v486_v50 = vmul.f32 %v1333_v27, %v469_v49 }
 0x14b   : > { %v510_v51 = vsel %vm260_vm0, %v486_v50, 0.0 }
 0x14c   : > { %v437_v52 = vpop.f32.mrf.mxu1  ;;  %511 = vadd.xlane.f32.xlu2 %v510_v51 }
 0x14d   : > { %v438_v53 = vadd.f32 %v437_v52, %v1329_v24 }
 0x14f   : > { %v470_v54 = vmax.f32 %v438_v53, 0.0 }
 0x151   : > { %v487_v55 = vmul.f32 %v1333_v27, %v470_v54 }
 0x153   : > { %v513_v56 = vsel %vm260_vm0, %v487_v55, 0.0 }
 0x154   : > { %v440_v57 = vpop.f32.mrf.mxu1  ;;  %514 = vadd.xlane.f32.xlu2 %v513_v56 }
 0x155   : > { %v441_v58 = vadd.f32 %v440_v57, %v1329_v24 }
 0x157   : > { %v471_v59 = vmax.f32 %v441_v58, 0.0 }
 0x159   : > { %v488_v60 = vmul.f32 %v1333_v27, %v471_v59 }
 0x15b   : > { %v516_v61 = vsel %vm260_vm0, %v488_v60, 0.0 }
 0x15c   : > { %v442_v62 = vpop.f32.mrf.mxu1  ;;  %517 = vadd.xlane.f32.xlu0 %v516_v61 }
 0x15d   : > { %v443_v63 = vadd.f32 %v442_v62, %v1329_v24 }
 0x15f   : > { %v472_v0 = vmax.f32 %v443_v63, 0.0 }
 0x161   : > { %v489_v1 = vmul.f32 %v1333_v27, %v472_v0 }
 0x163   : > { %v519_v2 = vsel %vm260_vm0, %v489_v1, 0.0 }
 0x164   : > { %520 = vadd.xlane.f32.xlu1 %v519_v2 }
 0x16a   : > { %v445_v3 = vpop.f32.mrf.mxu2 }
 0x16b   : > { %v446_v4 = vadd.f32 %v445_v3, %v1329_v24 }
 0x16d   : > { %v473_v5 = vmax.f32 %v446_v4, 0.0 }
 0x16f   : > { %v490_v6 = vmul.f32 %v1333_v27, %v473_v5 }
 0x171   : > { %v522_v7 = vsel %vm260_vm0, %v490_v6, 0.0 }
 0x172   : > { %v447_v8 = vpop.f32.mrf.mxu2  ;;  %523 = vadd.xlane.f32.xlu2 %v522_v7 }
 0x173   : > { %v448_v9 = vadd.f32 %v447_v8, %v1329_v24 }
 0x175   : > { %v474_v10 = vmax.f32 %v448_v9, 0.0 }
 0x177   : > { %v491_v11 = vmul.f32 %v1333_v27, %v474_v10 }
 0x179   : > { %v525_v12 = vsel %vm260_vm0, %v491_v11, 0.0 }
 0x17a   : > { %v450_v13 = vpop.f32.mrf.mxu2  ;;  %526 = vadd.xlane.f32.xlu0 %v525_v12 }
 0x17b   : > { %v451_v14 = vadd.f32 %v450_v13, %v1329_v24 }
 0x17d   : > { %v475_v15 = vmax.f32 %v451_v14, 0.0 }
 0x17f   : > { %v492_v16 = vmul.f32 %v1333_v27, %v475_v15 }
 0x181   : > { %v528_v17 = vsel %vm260_vm0, %v492_v16, 0.0 }
 0x182   : > { %v452_v18 = vpop.f32.mrf.mxu2  ;;  %529 = vadd.xlane.f32.xlu1 %v528_v17 }
 0x183   : > { %v453_v19 = vadd.f32 %v452_v18, %v1329_v24 }
 0x185   : > { %v476_v20 = vmax.f32 %v453_v19, 0.0 }
 0x187   : > { %v493_v21 = vmul.f32 %v1333_v27, %v476_v20 }
 0x189   : > { %v531_v22 = vsel %vm260_vm0, %v493_v21, 0.0 }
 0x18a   : > { %v455_v23 = vpop.f32.mrf.mxu2  ;;  %532 = vadd.xlane.f32.xlu2 %v531_v22 }
 0x18b   : > { %v456_v25 = vadd.f32 %v455_v23, %v1329_v24 }
 0x18d   : > { %v477_v26 = vmax.f32 %v456_v25, 0.0 }
 0x18f   : > { %v494_v28 = vmul.f32 %v1333_v27, %v477_v26 }
 0x191   : > { %v534_v29 = vsel %vm260_vm0, %v494_v28, 0.0 }
 0x192   : > { %v457_v31 = vpop.f32.mrf.mxu2  ;;  %535 = vadd.xlane.f32.xlu0 %v534_v29 }
 0x193   : > { %v458_v32 = vadd.f32 %v457_v31, %v1329_v24 }
 0x195   : > { %v478_v33 = vmax.f32 %v458_v32, 0.0 }
 0x197   : > { %v495_v34 = vmul.f32 %v1333_v27, %v478_v33 }
 0x199   : > { %v537_v35 = vsel %vm260_vm0, %v495_v34, 0.0 }
 0x19a   : > { %v460_v36 = vpop.f32.mrf.mxu2  ;;  %538 = vadd.xlane.f32.xlu1 %v537_v35 }
 0x19b   : > { %v461_v37 = vadd.f32 %v460_v36, %v1329_v24 }
 0x19d   : > { %v479_v38 = vmax.f32 %v461_v37, 0.0 }
 0x19f   : > { %v500_v40 = vpop.xlane.xlu0 %499  ;;  %v496_v41 = vmul.f32 %v1333_v27, %v479_v38 }
 0x1a0   : > { %v547_v43 = vadd.f32 %v1378_v39, %v500_v40 }
 0x1a1   : > { %v540_v42 = vsel %vm260_vm0, %v496_v41, 0.0 }
 0x1a2   : > { %v462_v44 = vpop.f32.mrf.mxu2  ;;  %541 = vadd.xlane.f32.xlu2 %v540_v42  ;;  %v1014_v47 = vmul.f32 -1.442695, %v547_v43 }
 0x1a3   : > { %v463_v45 = vadd.f32 %v462_v44, %v1329_v24 }
 0x1a4   : > { %1083 = vpow2.f32 %v1014_v47 }
 0x1a5   : > { %v480_v46 = vmax.f32 %v463_v45, 0.0 }
 0x1a7   : > { %v503_v48 = vpop.xlane.xlu0 %502  ;;  %v497_v49 = vmul.f32 %v1333_v27, %v480_v46 }
 0x1a8   : > { %v548_v30 = vadd.f32 %v1378_v39, %v503_v48 }
 0x1a9   : > { %v543_v50 = vsel %vm260_vm0, %v497_v49, 0.0 }
 0x1aa   : > { %544 = vadd.xlane.f32.xlu0 %v543_v50  ;;  %v1015_v51 = vmul.f32 -1.442695, %v548_v30  ;;  %v1084_v53 = vpop.eup %1083 }
 0x1ab   : > { %v611_v55 = vadd.f32 1.0, %v1084_v53 }
 0x1ac   : > { %1085 = vpow2.f32 %v1015_v51 }
 0x1ad   : > { %1087 = vrcp.f32 %v611_v55  ;;  %v638_v14 = vand.u32 2147483648, %v611_v55  ;;  %vm632_vm3 = vweird.f32 %v611_v55  ;;  %v636_v16 = vand.u32 2147483647, %v611_v55 }
 0x1af   : > { %v506_v52 = vpop.xlane.xlu1 %505  ;;  %v639_v22 = vor.u32 1.1754944e-38, %v638_v14  ;;  %vm637_vm5 = vcmp.eq.f32.partialorder %v636_v16, 8.507059e+37 }
 0x1b0   : > { %v549_v54 = vadd.f32 %v1378_v39, %v506_v52 }
 0x1b2   : > { %v1016_v56 = vmul.f32 -1.442695, %v549_v54  ;;  %v1086_v57 = vpop.eup %1085 }
 0x1b3   : > { %v612_v58 = vadd.f32 1.0, %v1086_v57  ;;  %v1088_v59 = vpop.eup %1087 }
 0x1b4   : > { %1089 = vpow2.f32 %v1016_v56  ;;  %v628_v63 = vmul.f32 %v1088_v59, %v611_v55  ;;  %vm633_vm2 = vweird.f32 %v1088_v59 }
 0x1b5   : > { %1091 = vrcp.f32 %v612_v58  ;;  %vm634_vm4 = vmor %vm632_vm3, %vm633_vm2  ;;  %v653_v32 = vand.u32 2147483648, %v612_v58  ;;  %vm647_vm7 = vweird.f32 %v612_v58  ;;  %v651_v34 = vand.u32 2147483647, %v612_v58 }
 0x1b6   : > { %v629_v2 = vsub.f32 1.0, %v628_v63 }
 0x1b7   : > { %v509_v24 = vpop.xlane.xlu1 %508  ;;  %v654_v41 = vor.u32 1.1754944e-38, %v653_v32  ;;  %vm652_vm9 = vcmp.eq.f32.partialorder %v651_v34, 8.507059e+37 }
 0x1b8   : > { %v550_v27 = vadd.f32 %v1378_v39, %v509_v24  ;;  %v630_v7 = vmul.f32 %v1088_v59, %v629_v2 }
 0x1ba   : > { %v1017_v60 = vmul.f32 -1.442695, %v550_v27  ;;  %v1090_v62 = vpop.eup %1089  ;;  %v631_v11 = vadd.f32 %v1088_v59, %v630_v7 }
 0x1bb   : > { %v1390_v1 = vadd.f32 1.0, %v1090_v62  ;;  %v1092_v3 = vpop.eup %1091 }
 0x1bc   : > { %1093 = vpow2.f32 %v1017_v60  ;;  %v643_v8 = vmul.f32 %v1092_v3, %v612_v58  ;;  %v635_v19 = vsel %vm634_vm4, %v1088_v59, %v631_v11  ;;  %vm648_vm6 = vweird.f32 %v1092_v3 }
 0x1bd   : > { %1095 = vrcp.f32 %v1390_v1  ;;  %v640_v26 = vsel %vm637_vm5, %v639_v22, %v635_v19  ;;  %vm649_vm8 = vmor %vm647_vm7, %vm648_vm6  ;;  %v668_v48 = vand.u32 2147483648, %v1390_v1  ;;  %vm662_vm11 = vweird.f32 %v1390_v1 }
 0x1be   : > { %v644_v12 = vsub.f32 1.0, %v643_v8  ;;  %v666_v50 = vand.u32 2147483647, %v1390_v1 }
 0x1bf   : > { %v512_v61 = vpop.xlane.xlu2 %511  ;;  %v669_v54 = vor.u32 1.1754944e-38, %v668_v48 }
 0x1c0   : > { %v551_v0 = vadd.f32 %v1378_v39, %v512_v61  ;;  %v645_v20 = vmul.f32 %v1092_v3, %v644_v12  ;;  %vm667_vm13 = vcmp.eq.f32.partialorder %v666_v50, 8.507059e+37 }
 0x1c2   : > { %v1018_v4 = vmul.f32 -1.442695, %v551_v0  ;;  %v1094_v6 = vpop.eup %1093  ;;  %v646_v28 = vadd.f32 %v1092_v3, %v645_v20 }
 0x1c3   : > { %v1394_v10 = vadd.f32 1.0, %v1094_v6  ;;  %v1096_v13 = vpop.eup %1095 }
 0x1c4   : > { %1097 = vpow2.f32 %v1018_v4  ;;  %v658_v21 = vmul.f32 %v1096_v13, %v1390_v1  ;;  %v650_v37 = vsel %vm649_vm8, %v1092_v3, %v646_v28  ;;  %vm663_vm10 = vweird.f32 %v1096_v13 }
 0x1c5   : > { %1099 = vrcp.f32 %v1394_v10  ;;  %v655_v44 = vsel %vm652_vm9, %v654_v41, %v650_v37  ;;  %vm664_vm12 = vmor %vm662_vm11, %vm663_vm10  ;;  %v683_v59 = vand.u32 2147483648, %v1394_v10  ;;  %vm677_vm15 = vweird.f32 %v1394_v10 }
 0x1c6   : > { %v659_v29 = vsub.f32 1.0, %v658_v21  ;;  %v681_v61 = vand.u32 2147483647, %v1394_v10 }
 0x1c7   : > { %v515_v5 = vpop.xlane.xlu2 %514  ;;  %v684_v3 = vor.u32 1.1754944e-38, %v683_v59 }
 0x1c8   : > { %v552_v9 = vadd.f32 %v1378_v39, %v515_v5  ;;  %v660_v38 = vmul.f32 %v1096_v13, %v659_v29  ;;  %vm682_vm1 = vcmp.eq.f32.partialorder %v681_v61, 8.507059e+37 }
 0x1ca   : > { %v1019_v15 = vmul.f32 -1.442695, %v552_v9  ;;  %v1098_v18 = vpop.eup %1097  ;;  %v661_v45 = vadd.f32 %v1096_v13, %v660_v38 }
 0x1cb   : > { %v1399_v25 = vadd.f32 1.0, %v1098_v18  ;;  %v1100_v31 = vpop.eup %1099 }
 0x1cc   : > { %1101 = vpow2.f32 %v1019_v15  ;;  %v673_v40 = vmul.f32 %v1100_v31, %v1394_v10  ;;  %v665_v51 = vsel %vm664_vm12, %v1096_v13, %v661_v45  ;;  %vm678_vm14 = vweird.f32 %v1100_v31 }
 0x1cd   : > { %1103 = vrcp.f32 %v1399_v25  ;;  %v670_v56 = vsel %vm667_vm13, %v669_v54, %v665_v51  ;;  %vm679_vm0 = vmor %vm677_vm15, %vm678_vm14  ;;  %v698_v10 = vand.u32 2147483648, %v1399_v25  ;;  %vm692_vm3 = vweird.f32 %v1399_v25 }
 0x1ce   : > { %v674_v46 = vsub.f32 1.0, %v673_v40  ;;  %v696_v12 = vand.u32 2147483647, %v1399_v25 }
 0x1cf   : > { %v518_v17 = vpop.xlane.xlu0 %517  ;;  %v699_v18 = vor.u32 1.1754944e-38, %v698_v10 }
 0x1d0   : > { %v553_v23 = vadd.f32 %v1378_v39, %v518_v17  ;;  %v675_v52 = vmul.f32 %v1100_v31, %v674_v46  ;;  %vm697_vm5 = vcmp.eq.f32.partialorder %v696_v12, 8.507059e+37 }
 0x1d2   : > { %v1020_v33 = vmul.f32 -1.442695, %v553_v23  ;;  %v1102_v36 = vpop.eup %1101  ;;  %v676_v24 = vadd.f32 %v1100_v31, %v675_v52 }
 0x1d3   : > { %v1404_v43 = vadd.f32 1.0, %v1102_v36  ;;  %v1104_v47 = vpop.eup %1103 }
 0x1d4   : > { %867 = vxpose.xlu1.b32.start [1/16] (narrow) %v640_v26, 8  ;;  %1105 = vpow2.f32 %v1020_v33  ;;  %v688_v53 = vmul.f32 %v1104_v47, %v1399_v25  ;;  %v680_v0 = vsel %vm679_vm0, %v1100_v31, %v676_v24  ;;  %vm693_vm2 = vweird.f32 %v1104_v47 }
 0x1d5   : > { %1107 = vrcp.f32 %v1404_v43  ;;  %v685_v5 = vsel %vm682_vm1, %v684_v3, %v680_v0  ;;  %vm694_vm4 = vmor %vm692_vm3, %vm693_vm2  ;;  %v713_v26 = vand.u32 2147483648, %v1404_v43  ;;  %vm707_vm7 = vweird.f32 %v1404_v43 }
 0x1d6   : > { %v689_v57 = vsub.f32 1.0, %v688_v53  ;;  %v711_v29 = vand.u32 2147483647, %v1404_v43 }
 0x1d7   : > { %v521_v35 = vpop.xlane.xlu1 %520  ;;  %v714_v36 = vor.u32 1.1754944e-38, %v713_v26 }
 0x1d8   : > { %v554_v42 = vadd.f32 %v1378_v39, %v521_v35  ;;  %v690_v1 = vmul.f32 %v1104_v47, %v689_v57  ;;  %vm712_vm9 = vcmp.eq.f32.partialorder %v711_v29, 8.507059e+37 }
 0x1da   : > { %v1021_v49 = vmul.f32 -1.442695, %v554_v42  ;;  %v1106_v30 = vpop.eup %1105  ;;  %v691_v6 = vadd.f32 %v1104_v47, %v690_v1 }
 0x1db   : > { %v1411_v55 = vadd.f32 1.0, %v1106_v30  ;;  %v1413_v27 = vpop.eup %1107 }
 0x1dc   : > { %868 = vxpose.xlu1.b32.cont [2/16] (narrow) %v655_v44, 8  ;;  %1109 = vpow2.f32 %v1021_v49  ;;  %v703_v2 = vmul.f32 %v1413_v27, %v1404_v43  ;;  %v695_v15 = vsel %vm694_vm4, %v1104_v47, %v691_v6  ;;  %vm708_vm6 = vweird.f32 %v1413_v27 }
 0x1dd   : > { %1111 = vrcp.f32 %v1411_v55  ;;  %v700_v20 = vsel %vm697_vm5, %v699_v18, %v695_v15  ;;  %vm709_vm8 = vmor %vm707_vm7, %vm708_vm6  ;;  %v728_v44 = vand.u32 2147483648, %v1411_v55  ;;  %vm722_vm11 = vweird.f32 %v1411_v55 }
 0x1de   : > { %v704_v7 = vsub.f32 1.0, %v703_v2  ;;  %v726_v46 = vand.u32 2147483647, %v1411_v55 }
 0x1df   : > { %v729_v51 = vor.u32 1.1754944e-38, %v728_v44 }
 0x1e0   : > { %v705_v16 = vmul.f32 %v1413_v27, %v704_v7  ;;  %vm727_vm13 = vcmp.eq.f32.partialorder %v726_v46, 8.507059e+37 }
 0x1e2   : > { %v1110_v62 = vpop.eup %1109  ;;  %v706_v21 = vadd.f32 %v1413_v27, %v705_v16 }
 0x1e3   : > { %v1422_v4 = vadd.f32 1.0, %v1110_v62  ;;  %v1424_v8 = vpop.eup %1111 }
 0x1e4   : > { %869 = vxpose.xlu1.b32.cont [3/16] (narrow) %v670_v56, 8  ;;  %v718_v17 = vmul.f32 %v1424_v8, %v1411_v55  ;;  %v710_v33 = vsel %vm709_vm8, %v1413_v27, %v706_v21  ;;  %vm723_vm10 = vweird.f32 %v1424_v8 }
 0x1e5   : > { %v524_v58 = vpop.xlane.xlu2 %523  ;;  %v715_v38 = vsel %vm712_vm9, %v714_v36, %v710_v33  ;;  %vm724_vm12 = vmor %vm722_vm11, %vm723_vm10  ;;  %v743_v57 = vand.u32 2147483648, %v1422_v4  ;;  %vm737_vm15 = vweird.f32 %v1422_v4 }
 0x1e6   : > { %v555_v60 = vadd.f32 %v1378_v39, %v524_v58  ;;  %v719_v22 = vsub.f32 1.0, %v718_v17  ;;  %v741_v58 = vand.u32 2147483647, %v1422_v4 }
 0x1e7   : > { %v744_v0 = vor.u32 1.1754944e-38, %v743_v57 }
 0x1e8   : > { %v1022_v63 = vmul.f32 -1.442695, %v555_v60  ;;  %v720_v34 = vmul.f32 %v1424_v8, %v719_v22  ;;  %vm742_vm1 = vcmp.eq.f32.partialorder %v741_v58, 8.507059e+37 }
 0x1ea   : > { %1113 = vpow2.f32 %v1022_v63  ;;  %v721_v40 = vadd.f32 %v1424_v8, %v720_v34 }
 0x1eb   : > { %1115 = vrcp.f32 %v1422_v4 }
 0x1ec   : > { %870 = vxpose.xlu1.b32.cont [4/16] (narrow) %v685_v5, 8  ;;  %v725_v49 = vsel %vm724_vm12, %v1424_v8, %v721_v40 }
 0x1ed   : > { %v527_v9 = vpop.xlane.xlu0 %526  ;;  %v730_v53 = vsel %vm727_vm13, %v729_v51, %v725_v49 }
 0x1ee   : > { %v556_v11 = vadd.f32 %v1378_v39, %v527_v9 }
 0x1f0   : > { %v1114_v13 = vpop.eup %1113  ;;  %v1023_v14 = vmul.f32 -1.442695, %v556_v11 }
 0x1f1   : > { %v1434_v19 = vadd.f32 1.0, %v1114_v13  ;;  %v1438_v23 = vpop.eup %1115 }
 0x1f2   : > { %1117 = vpow2.f32 %v1023_v14  ;;  %v733_v35 = vmul.f32 %v1438_v23, %v1422_v4  ;;  %vm738_vm14 = vweird.f32 %v1438_v23 }
 0x1f3   : > { %1119 = vrcp.f32 %v1434_v19  ;;  %vm739_vm0 = vmor %vm737_vm15, %vm738_vm14  ;;  %v758_v7 = vand.u32 2147483648, %v1434_v19  ;;  %vm752_vm3 = vweird.f32 %v1434_v19  ;;  %v756_v9 = vand.u32 2147483647, %v1434_v19 }
 0x1f4   : > { %871 = vxpose.xlu1.b32.cont [5/16] (narrow) %v700_v20, 8  ;;  %v734_v41 = vsub.f32 1.0, %v733_v35 }
 0x1f5   : > { %v530_v25 = vpop.xlane.xlu1 %529  ;;  %v759_v15 = vor.u32 1.1754944e-38, %v758_v7  ;;  %vm757_vm5 = vcmp.eq.f32.partialorder %v756_v9, 8.507059e+37 }
 0x1f6   : > { %v557_v28 = vadd.f32 %v1378_v39, %v530_v25  ;;  %v735_v50 = vmul.f32 %v1438_v23, %v734_v41 }
 0x1f8   : > { %v1118_v31 = vpop.eup %1117  ;;  %v1024_v32 = vmul.f32 -1.442695, %v557_v28  ;;  %v736_v54 = vadd.f32 %v1438_v23, %v735_v50 }
 0x1f9   : > { %v1449_v37 = vadd.f32 1.0, %v1118_v31  ;;  %v1453_v42 = vpop.eup %1119 }
 0x1fa   : > { %1121 = vpow2.f32 %v1024_v32  ;;  %v748_v30 = vmul.f32 %v1453_v42, %v1434_v19  ;;  %v740_v61 = vsel %vm739_vm0, %v1438_v23, %v736_v54  ;;  %vm753_vm2 = vweird.f32 %v1453_v42 }
 0x1fb   : > { %1123 = vrcp.f32 %v1449_v37  ;;  %v745_v2 = vsel %vm742_vm1, %v744_v0, %v740_v61  ;;  %vm754_vm4 = vmor %vm752_vm3, %vm753_vm2  ;;  %v773_v22 = vand.u32 2147483648, %v1449_v37  ;;  %vm767_vm7 = vweird.f32 %v1449_v37 }
 0x1fc   : > { %872 = vxpose.xlu1.b32.cont [6/16] (narrow) %v715_v38, 8  ;;  %v749_v55 = vsub.f32 1.0, %v748_v30  ;;  %v771_v25 = vand.u32 2147483647, %v1449_v37 }
 0x1fd   : > { %v533_v43 = vpop.xlane.xlu2 %532  ;;  %v774_v33 = vor.u32 1.1754944e-38, %v773_v22 }
 0x1fe   : > { %v558_v45 = vadd.f32 %v1378_v39, %v533_v43  ;;  %v750_v62 = vmul.f32 %v1453_v42, %v749_v55  ;;  %vm772_vm9 = vcmp.eq.f32.partialorder %v771_v25, 8.507059e+37 }
 0x200   : > { %v1122_v47 = vpop.eup %1121  ;;  %v1025_v48 = vmul.f32 -1.442695, %v558_v45  ;;  %v751_v3 = vadd.f32 %v1453_v42, %v750_v62 }
 0x201   : > { %v1464_v52 = vadd.f32 1.0, %v1122_v47  ;;  %v1468_v56 = vpop.eup %1123 }
 0x202   : > { %1125 = vpow2.f32 %v1025_v48  ;;  %v763_v63 = vmul.f32 %v1468_v56, %v1449_v37  ;;  %v755_v12 = vsel %vm754_vm4, %v1453_v42, %v751_v3  ;;  %vm768_vm6 = vweird.f32 %v1468_v56 }
 0x203   : > { %1127 = vrcp.f32 %v1464_v52  ;;  %v760_v17 = vsel %vm757_vm5, %v759_v15, %v755_v12  ;;  %vm769_vm8 = vmor %vm767_vm7, %vm768_vm6  ;;  %v788_v41 = vand.u32 2147483648, %v1464_v52  ;;  %vm782_vm11 = vweird.f32 %v1464_v52 }
 0x204   : > { %873 = vxpose.xlu1.b32.cont [7/16] (narrow) %v730_v53, 8  ;;  %v764_v4 = vsub.f32 1.0, %v763_v63  ;;  %v786_v43 = vand.u32 2147483647, %v1464_v52 }
 0x205   : > { %v536_v24 = vpop.xlane.xlu0 %535  ;;  %v789_v49 = vor.u32 1.1754944e-38, %v788_v41 }
 0x206   : > { %v559_v27 = vadd.f32 %v1378_v39, %v536_v24  ;;  %v765_v13 = vmul.f32 %v1468_v56, %v764_v4  ;;  %vm787_vm13 = vcmp.eq.f32.partialorder %v786_v43, 8.507059e+37 }
 0x208   : > { %v1126_v59 = vpop.eup %1125  ;;  %v1026_v60 = vmul.f32 -1.442695, %v559_v27  ;;  %v766_v18 = vadd.f32 %v1468_v56, %v765_v13 }
 0x209   : > { %v1479_v1 = vadd.f32 1.0, %v1126_v59  ;;  %v1483_v5 = vpop.eup %1127 }
 0x20a   : > { %1129 = vpow2.f32 %v1026_v60  ;;  %v778_v14 = vmul.f32 %v1483_v5, %v1464_v52  ;;  %v770_v29 = vsel %vm769_vm8, %v1468_v56, %v766_v18  ;;  %vm783_vm10 = vweird.f32 %v1483_v5 }
 0x20b   : > { %1131 = vrcp.f32 %v1479_v1  ;;  %v775_v35 = vsel %vm772_vm9, %v774_v33, %v770_v29  ;;  %vm784_vm12 = vmor %vm782_vm11, %vm783_vm10  ;;  %v803_v53 = vand.u32 2147483648, %v1479_v1  ;;  %vm797_vm15 = vweird.f32 %v1479_v1 }
 0x20c   : > { %874 = vxpose.xlu1.b32.cont [8/16] (narrow) %v745_v2, 8  ;;  %v779_v19 = vsub.f32 1.0, %v778_v14  ;;  %v801_v54 = vand.u32 2147483647, %v1479_v1 }
 0x20d   : > { %v539_v6 = vpop.xlane.xlu1 %538  ;;  %v804_v27 = vor.u32 1.1754944e-38, %v803_v53 }
 0x20e   : > { %v560_v8 = vadd.f32 %v1378_v39, %v539_v6  ;;  %v780_v31 = vmul.f32 %v1483_v5, %v779_v19  ;;  %vm802_vm1 = vcmp.eq.f32.partialorder %v801_v54, 8.507059e+37 }
 0x210   : > { %v1130_v10 = vpop.eup %1129  ;;  %v1027_v11 = vmul.f32 -1.442695, %v560_v8  ;;  %v781_v36 = vadd.f32 %v1483_v5, %v780_v31 }
 0x211   : > { %v1494_v16 = vadd.f32 1.0, %v1130_v10  ;;  %v1132_v20 = vpop.eup %1131 }
 0x212   : > { %1133 = vpow2.f32 %v1027_v11  ;;  %v793_v32 = vmul.f32 %v1132_v20, %v1479_v1  ;;  %v785_v46 = vsel %vm784_vm12, %v1483_v5, %v781_v36  ;;  %vm798_vm14 = vweird.f32 %v1132_v20 }
 0x213   : > { %1135 = vrcp.f32 %v1494_v16  ;;  %v790_v30 = vsel %vm787_vm13, %v789_v49, %v785_v46  ;;  %vm799_vm0 = vmor %vm797_vm15, %vm798_vm14  ;;  %v818_v63 = vand.u32 2147483648, %v1494_v16  ;;  %vm812_vm3 = vweird.f32 %v1494_v16 }
 0x214   : > { %875 = vxpose.xlu1.b32.cont [9/16] (narrow) %v760_v17, 8  ;;  %v794_v37 = vsub.f32 1.0, %v793_v32  ;;  %v816_v0 = vand.u32 2147483647, %v1494_v16 }
 0x215   : > { %v542_v21 = vpop.xlane.xlu2 %541  ;;  %v819_v4 = vor.u32 1.1754944e-38, %v818_v63 }
 0x216   : > { %v561_v23 = vadd.f32 %v1378_v39, %v542_v21  ;;  %v795_v47 = vmul.f32 %v1132_v20, %v794_v37  ;;  %vm817_vm5 = vcmp.eq.f32.partialorder %v816_v0, 8.507059e+37 }
 0x218   : > { %v1134_v26 = vpop.eup %1133  ;;  %v1028_v28 = vmul.f32 -1.442695, %v561_v23 }
 0x219   : > { %v1506_v34 = vadd.f32 1.0, %v1134_v26  ;;  %v1136_v38 = vpop.eup %1135 }
 0x21a   : > { %1137 = vpow2.f32 %v1028_v28  ;;  %v808_v48 = vmul.f32 %v1136_v38, %v1494_v16  ;;  %vm813_vm2 = vweird.f32 %v1136_v38 }
 0x21b   : > { %1139 = vrcp.f32 %v1506_v34  ;;  %vm814_vm4 = vmor %vm812_vm3, %vm813_vm2  ;;  %v833_v9 = vand.u32 2147483648, %v1506_v34  ;;  %vm827_vm7 = vweird.f32 %v1506_v34  ;;  %v831_v10 = vand.u32 2147483647, %v1506_v34 }
 0x21c   : > { %876 = vxpose.xlu1.b32.cont [10/16] (narrow) %v775_v35, 8  ;;  %v809_v51 = vsub.f32 1.0, %v808_v48 }
 0x21d   : > { %v545_v40 = vpop.xlane.xlu0 %544  ;;  %v834_v14 = vor.u32 1.1754944e-38, %v833_v9  ;;  %vm832_vm9 = vcmp.eq.f32.partialorder %v831_v10, 8.507059e+37 }
 0x21e   : > { %v562_v42 = vadd.f32 %v1378_v39, %v545_v40  ;;  %v796_v39 = vadd.f32 %v1132_v20, %v795_v47  ;;  %v810_v24 = vmul.f32 %v1136_v38, %v809_v51 }
 0x220   : > { %v1138_v44 = vpop.eup %1137  ;;  %v1029_v45 = vmul.f32 -1.442695, %v562_v42  ;;  %v800_v56 = vsel %vm799_vm0, %v1132_v20, %v796_v39  ;;  %v811_v60 = vadd.f32 %v1136_v38, %v810_v24 }
 0x221   : > { %v625_v50 = vadd.f32 1.0, %v1138_v44  ;;  %v1140_v52 = vpop.eup %1139  ;;  %v805_v59 = vsel %vm802_vm1, %v804_v27, %v800_v56 }
 0x222   : > { %1141 = vpow2.f32 %v1029_v45  ;;  %v823_v57 = vmul.f32 %v1140_v52, %v1506_v34  ;;  %v815_v1 = vsel %vm814_vm4, %v1136_v38, %v811_v60  ;;  %vm828_vm6 = vweird.f32 %v1140_v52 }
 0x223   : > { %1143 = vrcp.f32 %v625_v50  ;;  %v820_v5 = vsel %vm817_vm5, %v819_v4, %v815_v1  ;;  %vm829_vm8 = vmor %vm827_vm7, %vm828_vm6  ;;  %vm842_vm10 = vweird.f32 %v625_v50  ;;  %v848_v18 = vand.u32 2147483648, %v625_v50 }
 0x224   : > { %877 = vxpose.xlu1.b32.cont [11/16] (narrow) %v790_v30, 8  ;;  %v824_v61 = vsub.f32 1.0, %v823_v57  ;;  %v846_v19 = vand.u32 2147483647, %v625_v50 }
 0x225   : > { %v849_v22 = vor.u32 1.1754944e-38, %v848_v18 }
 0x226   : > { %v825_v2 = vmul.f32 %v1140_v52, %v824_v61  ;;  %vm847_vm13 = vcmp.eq.f32.partialorder %v846_v19, 8.507059e+37 }
 0x228   : > { %v1142_v55 = vpop.eup %1141  ;;  %v826_v6 = vadd.f32 %v1140_v52, %v825_v2 }
 0x229   : > { %v626_v58 = vadd.f32 1.0, %v1142_v55  ;;  %v1144_v62 = vpop.eup %1143 }
 0x22a   : > { %v838_v3 = vmul.f32 %v1144_v62, %v625_v50  ;;  %v830_v11 = vsel %vm829_vm8, %v1140_v52, %v826_v6  ;;  %vm843_vm11 = vweird.f32 %v1144_v62 }
 0x22b   : > { %1145 = vrcp.f32 %v626_v58  ;;  %v835_v15 = vsel %vm832_vm9, %v834_v14, %v830_v11  ;;  %vm844_vm12 = vmor %vm842_vm10, %vm843_vm11  ;;  %v863_v26 = vand.u32 2147483648, %v626_v58  ;;  %vm857_vm15 = vweird.f32 %v626_v58 }
 0x22c   : > { %878 = vxpose.xlu1.b32.cont [12/16] (narrow) %v805_v59, 8  ;;  %v839_v7 = vsub.f32 1.0, %v838_v3  ;;  %v861_v28 = vand.u32 2147483647, %v626_v58 }
 0x22d   : > { %v864_v31 = vor.u32 1.1754944e-38, %v863_v26 }
 0x22e   : > { %v840_v12 = vmul.f32 %v1144_v62, %v839_v7  ;;  %vm862_vm1 = vcmp.eq.f32.partialorder %v861_v28, 8.507059e+37 }
 0x230   : > { %v841_v16 = vadd.f32 %v1144_v62, %v840_v12 }
 0x231   : > { %v1146_v8 = vpop.eup %1145 }
 0x232   : > { %v853_v13 = vmul.f32 %v1146_v8, %v626_v58  ;;  %v845_v20 = vsel %vm844_vm12, %v1144_v62, %v841_v16  ;;  %vm858_vm14 = vweird.f32 %v1146_v8 }
 0x233   : > { %v850_v23 = vsel %vm847_vm13, %v849_v22, %v845_v20  ;;  %vm859_vm0 = vmor %vm857_vm15, %vm858_vm14 }
 0x234   : > { %879 = vxpose.xlu1.b32.cont [13/16] (narrow) %v820_v5, 8  ;;  %v854_v17 = vsub.f32 1.0, %v853_v13 }
 0x236   : > { %v855_v21 = vmul.f32 %v1146_v8, %v854_v17 }
 0x238   : > { %v856_v25 = vadd.f32 %v1146_v8, %v855_v21 }
 0x23a   : > { %v860_v29 = vsel %vm859_vm0, %v1146_v8, %v856_v25 }
 0x23b   : > { %v865_v32 = vsel %vm862_vm1, %v864_v31, %v860_v29 }
 0x23c   : > { %880 = vxpose.xlu1.b32.cont [14/16] (narrow) %v835_v15, 8 }
 0x244   : > { %881 = vxpose.xlu1.b32.cont [15/16] (narrow) %v850_v23, 8 }
 0x24c   : > { %882 = vxpose.xlu1.b32.end [16/16] (narrow) %v865_v32, 8 }
 0x278   : > { %v883_v33 = vpop.trf.xlu1 }
 0x279   : > { %899 = vst [vmem:[%s202_s7] sm:$0x1] %v883_v33 }
 0x27a   : > { %1174 = shalt.err (!%p1171_p3)
}
 0x27b   : > { %1044 = dma.vmem_to_hbm [thread:$0]  (%p1274_p5), %s912_s8, 16, %s914_s9, %s901_s10  }
 0x27c PF: > { %p1050_p4 = scmp.ge.s32.totalorder %s1209_s18, 2  ;;  %s925_s23 = sand.u32 1, %s1197_s15  }
 0x27d   : > { %s926_s27 = scalar_lea.sflag [#allocation3], %s925_s23 }
 0x27e   : > { %p1047_p7 = pnand %p1050_p4, %p1278_p6 }
 0x280   : > { %p1048_p8 = pneg %p1047_p7 }
 0x282   : > { %1192 = dma.done.wait (%p1048_p8), %s926_s27, 16  }
 0x283   : > { %1194 = vsyncadd (%p1048_p8), %s926_s27, 4294967280  ;;  %p14_p9 = scmp.ge.s32.totalorder %s1261_s21, 5   ;;  %s1566_s15 = smov %s1201_s16 }
 0x284   : > { %s1567_s16 = smov %s1205_s17  ;;  %s1568_s17 = smov %s1272_s24 }
 0x285   : > { %s1569_s18 = smov %s1261_s21  ;;  %16 = sbr.rel (!%p14_p9) target bundleno = 3 (0x3), region = 71 }
 0x28a   :  { %931 = vsyncpa [#allocation3], 1 }
 0x28b   :  { %933 = vsyncpa [#allocation3 + $0x1], 1 }

</bundles_post_ra>
